<compile_context>
chip_gen: v7x
topology: tpu7x:2x2x1
jax: 0.10.0
libtpu: 0.0.40
codegen_flags: <defaults>
</compile_context>

<pallas_src>
import functools

import jax
import jax.numpy as jnp
from jax.experimental import pallas as pl
from jax.experimental.pallas import tpu as pltpu


def _round_up(x, m):
    return -(-x // m) * m


def _round_down(x, m):
    return (x // m) * m


# ----------------------------- kernels ------------------------------------


def _gap_full_kernel(x_ref, o_ref, *, inv_hw):
    """Fast path: block covers the full H*W extent -> one-shot reduction.

    x_ref: (TR, HW) tile of the flattened (N*C, H*W) input
    o_ref: (TR, 1)  per-row mean (f32)
    """
    o_ref[...] = jnp.sum(x_ref[...].astype(jnp.float32),
                         axis=1, keepdims=True) * inv_hw


def _gap_tiled_kernel(x_ref, o_ref, *, inv_hw, hw, ts, mask_spatial):
    """Tiled reduction over the spatial (last, 'arbitrary') grid axis.

    x_ref: (TR, TS) spatial slab; o_ref: (TR, 1) f32, VMEM-resident across
    the spatial axis (its block index does not depend on s).
    """
    s = pl.program_id(1)

    @pl.when(s == 0)
    def _():
        o_ref[...] = jnp.zeros_like(o_ref)

    x = x_ref[...].astype(jnp.float32)
    if mask_spatial:
        # Ragged last spatial tile: lanes >= HW - s*TS hold garbage -> zero them.
        lane = jax.lax.broadcasted_iota(jnp.int32, x.shape, 1)
        x = jnp.where(lane < (hw - s * ts), x, 0.0)
    o_ref[...] += jnp.sum(x, axis=1, keepdims=True)

    @pl.when(s == pl.num_programs(1) - 1)
    def _():
        o_ref[...] *= inv_hw


# ----------------------------- wrapper -------------------------------------


def _pick_row_tile(tr_cap, nc, nc_sub, sublane):
    """Largest sublane-aligned row tile <= tr_cap, with v7x 2-TC splitting."""
    tr = max(sublane, _round_down(tr_cap, sublane))
    tr = min(tr, nc_sub)
    if tr >= nc:
        tr = nc                      # single full-dim tile: no row over-run at all
    # Ensure >= 2 row tiles so the 'parallel' axis shards across v7x's 2 TCs
    # (costs nothing on single-TC v5e/v6e).
    if -(-nc // tr) == 1 and nc_sub >= 2 * sublane:
        tr = max(sublane, _round_up(-(-nc // 2), sublane))
    return tr


def global_avg_pool2d(x_nchw, *, hw_fastpath_max=4096):
    """x_nchw: (N, C, H, W) -> (N, C) spatial mean, same dtype as the input."""
    N, C, H, W = x_nchw.shape
    NC, HW = N * C, H * W
    # NCHW is row-contiguous in H*W -> this reshape is a pure view; the
    # reduced spatial axis lands on the lane (fast) dimension.
    xf = x_nchw.reshape(NC, HW)

    itemsize = jnp.dtype(xf.dtype).itemsize
    sublane = max(8, 32 // itemsize)       # native sublane tile: f32=8, bf16=16, int8=32
    LANES = 128

    # Chip-aware VMEM budget (v7x: 64 MiB/TC, v5e/v6e: 128 MiB).
    try:
        vmem_cap = int(pltpu.get_tpu_info().vmem_capacity_bytes)
    except Exception:  # pragma: no cover - conservative fallback
        vmem_cap = 64 << 20                # v7x floor: safe on every generation
    tile_budget = min(16 << 20, vmem_cap // 4)   # per input tile (double-buffered)

    HW_lane = _round_up(HW, LANES)         # VMEM lane footprint of one row
    NC_sub = _round_up(NC, sublane)
    inv_hw = 1.0 / HW

    if HW <= hw_fastpath_max:
        # ---- fast path: full spatial extent per block, no reduction axis ----
        TR = _pick_row_tile(tile_budget // (HW_lane * itemsize), NC, NC_sub, sublane)
        grid = (-(-NC // TR),)
        in_tile_vmem = TR * HW_lane * itemsize
        kernel = functools.partial(_gap_full_kernel, inv_hw=inv_hw)
        in_specs = [pl.BlockSpec((TR, HW), lambda r: (r, 0))]
        out_specs = pl.BlockSpec((TR, 1), lambda r: (r, 0))
        dim_sem = ("parallel",)
    else:
        # ---- tiled-reduction path: rows parallel, spatial (reduction) last ----
        TR = _pick_row_tile(512, NC, NC_sub, sublane)
        TS = _round_down(tile_budget // (max(TR, 1) * itemsize), LANES)
        TS = max(LANES, min(TS, HW_lane))
        grid = (-(-NC // TR), -(-HW // TS))
        in_tile_vmem = TR * TS * itemsize
        kernel = functools.partial(_gap_tiled_kernel, inv_hw=inv_hw,
                                   hw=HW, ts=TS,
                                   mask_spatial=(HW % TS != 0))
        in_specs = [pl.BlockSpec((TR, TS), lambda r, s: (r, s))]
        out_specs = pl.BlockSpec((TR, 1), lambda r, s: (r, 0))
        dim_sem = ("parallel", "arbitrary")

    # Input is double-buffered by the pipeline; add output blocks + headroom,
    # and stay comfortably inside the physical VMEM (64 MiB on v7x).
    out_tile_vmem = _round_up(TR, 8) * LANES * 4
    vmem_limit = int(min(vmem_cap * 3 // 4,
                         max(2 * in_tile_vmem + 2 * out_tile_vmem + (6 << 20),
                             16 << 20)))

    out = pl.pallas_call(
        kernel,
        out_shape=jax.ShapeDtypeStruct((NC, 1), jnp.float32),
        grid=grid,
        in_specs=in_specs,
        out_specs=out_specs,
        compiler_params=pltpu.CompilerParams(
            dimension_semantics=dim_sem,
            vmem_limit_bytes=vmem_limit),
        cost_estimate=pl.CostEstimate(
            flops=NC * HW,
            transcendentals=0,
            bytes_accessed=NC * HW * itemsize + NC * 4),
    )(xf)

    return out[:, 0].reshape(N, C).astype(x_nchw.dtype)


# ------------------------------ test ---------------------------------------

if __name__ == "__main__":
    key = jax.random.PRNGKey(0)

    # Primary case (matches the module's expected small test shape).
    N, C, H, W = 2, 4, 16, 16
    x = jax.random.normal(key, (N, C, H, W), jnp.float32)
    out = jax.block_until_ready(global_avg_pool2d(x))
    ref = jax.block_until_ready(jnp.mean(x, axis=(2, 3)))
    assert out.shape == ref.shape == (N, C), (out.shape, ref.shape)
    assert jnp.allclose(out, ref, atol=1e-5, rtol=1e-5), (
        f"max abs err {jnp.max(jnp.abs(out - ref))}")

    # Ragged fast path: 7x7 GAP (HW=49, NC=6 not sublane-aligned).
    x2 = jax.random.normal(jax.random.PRNGKey(1), (2, 3, 7, 7), jnp.float32)
    out2 = jax.block_until_ready(global_avg_pool2d(x2))
    ref2 = jnp.mean(x2, axis=(2, 3))
    assert jnp.allclose(out2, ref2, atol=1e-5, rtol=1e-5), (
        f"max abs err {jnp.max(jnp.abs(out2 - ref2))}")

    # Tiled-reduction path with a ragged spatial tile (HW=4900 > fast-path cap).
    x3 = jax.random.normal(jax.random.PRNGKey(2), (1, 2, 70, 70), jnp.float32)
    out3 = jax.block_until_ready(global_avg_pool2d(x3))
    ref3 = jnp.mean(x3, axis=(2, 3))
    assert jnp.allclose(out3, ref3, atol=1e-5, rtol=1e-5), (
        f"max abs err {jnp.max(jnp.abs(out3 - ref3))}")

    print("KERNEL_OK")
</pallas_src>

<mosaic_0001>
module attributes {stable_mosaic.version = 11 : i64} {
  func.func @_gap_full_kernel(%arg0: i32, %arg1: memref<8x256xf32, #tpu.memory_space<vmem>>, %arg2: memref<8x1xf32, #tpu.memory_space<vmem>>) attributes {dimension_semantics = [#tpu.dimension_semantics<parallel>], iteration_bounds = array<i64: 1>, scalar_prefetch = 0 : i64, scratch_operands = 0 : i64, tpu.core_type = #tpu.core_type<tc>, window_params = [{transform_indices = @transform_0, window_bounds = array<i64: 8, 256>}, {transform_indices = @transform_1, window_bounds = array<i64: 8, 1>}]} {
    %c0 = arith.constant 0 : index
    %c0_0 = arith.constant 0 : index
    %0 = vector.load %arg1[%c0, %c0_0] : memref<8x256xf32, #tpu.memory_space<vmem>>, vector<8x256xf32>
    %cst = arith.constant dense<0.000000e+00> : vector<8xf32>
    %1 = vector.multi_reduction <add>, %0, %cst [1] : vector<8x256xf32> to vector<8xf32>
    %2 = vector.shape_cast %1 : vector<8xf32> to vector<8x1xf32>
    %cst_1 = arith.constant 3.906250e-03 : f32
    %3 = vector.broadcast %cst_1 : f32 to vector<8x1xf32>
    %4 = arith.mulf %2, %3 : vector<8x1xf32>
    %c0_2 = arith.constant 0 : index
    %c0_3 = arith.constant 0 : index
    %5 = vector.load %arg2[%c0_2, %c0_3] : memref<8x1xf32, #tpu.memory_space<vmem>>, vector<8x1xf32>
    tpu.vector_store %arg2[%c0_2, %c0_3], %4 {strides = array<i32>} : memref<8x1xf32, #tpu.memory_space<vmem>>, vector<8x1xf32>,
    return
  }
  func.func @transform_0(%arg0: i32) -> (i32, i32) {
    %c0_i32 = arith.constant 0 : i32
    %c0_i32_0 = arith.constant 0 : i32
    return %arg0, %c0_i32 : i32, i32
  }
  func.func @transform_1(%arg0: i32) -> (i32, i32) {
    %c0_i32 = arith.constant 0 : i32
    %c0_i32_0 = arith.constant 0 : i32
    return %arg0, %c0_i32 : i32, i32
  }
}

</mosaic_0001>

<bundles_post_ra>
// kernel: tpu_custom_call.1
= control target key start
LH: loop header
LB: loop body
LE: loop exit
PB: predicated region body
PF: predicated region fallthrough
CT: control target
= control target key end

     0   :  { %6 = vsyncpa [#allocation3], 0  ;;  %s58_s6 = smov [#allocation2]   ;;  %s84_s0 = inlined_call_operand.hbm [shape: f32[8,256], index: 0, kind: input, shape index: {}]   ;;  %s85_s1 = inlined_call_operand.vmem [shape: f32[8,1], index: 1, kind: output, shape index: {}]  }
   0x1   :  { %s13_s7 = sshll.u32 %s58_s6, 4  ;;  %s34_s10 = scalar_lea.hbm %s84_s0, 256  ;;  %s14_s7 = int_to_ptr.vmem [resolvable:$true] %s13_s7 }
   0x2   :  { %p35_p0 = scmp.ne.s32.totalorder %s84_s0, %s34_s10  ;;  %p38_p1 = scmp.lt.u32.totalorder %s34_s10, %s84_s0 }
   0x4   :  { %p40_p2 = pnand %p38_p1, %p35_p0 }
   0x6   :  { %43 = shalt.err (!%p40_p2)
}
   0x7   :  { %s44_s15 = scalar_lea.vmem %s14_s7, 256  ;;  %p49_p4 = scmp.lt.s32.totalorder %s14_s7, %s14_s7 }
   0x8   :  { %p45_p3 = scmp.ne.s32.totalorder %s14_s7, %s44_s15  ;;  %p50_p5 = scmp.lt.s32.totalorder %s44_s15, %s44_s15 }
   0xa   :  { %p51_p6 = por %p50_p5, %p49_p4 }
   0xc   :  { %p52_p7 = pnand %p51_p6, %p45_p3 }
   0xe   :  { %55 = shalt.err (!%p52_p7)
}
   0xf   :  { %16 = dma.hbm_to_vmem [thread:$0]  %s84_s0, 256, %s14_s7, [#allocation3]  }
  0x10   :  { %56 = dma.done.wait [#allocation3], 256  }
  0x11   :  { %57 = vsyncadd [#allocation3], 4294967040  ;;  %v20_v0 = vld [vmem:[#allocation2] sm:$0xff]  ;;  %v21_v1 = vld [vmem:[#allocation2 + $0x8] sm:$0xff]  ;;  %vm26_vm0 = vcmask 7168  }
  0x12   :  { %v22_v2 = vadd.f32 %v21_v1, %v20_v0 }
  0x14   :  { %23 = vadd.xlane.f32.xlu0 %v22_v2 }
  0xa1   :  { %v24_v3 = vpop.xlane.xlu0 %23 }
  0xa2   :  { %v25_v4 = vmul.f32 0.00390625, %v24_v3 }
  0xa4   :  { %27 = vst.msk [vmem:[%s85_s1] sm:$0xff] %vm26_vm0, %v25_v4 }
  0xa5   :  { %32 = vsyncpa [#allocation3], 1 }

</bundles_post_ra>
